<compile_context>
chip_gen: v6e
topology: v6e:2x2x1
jax: 0.10.0
libtpu: 0.0.40
codegen_flags: <defaults>
</compile_context>

<pallas_src>
import functools
import math

import jax
import jax.numpy as jnp
from jax.experimental import pallas as pl
from jax.experimental.pallas import tpu as pltpu


_SPLIT_BYTES = 2 * 1024 * 1024   # above this, split N so both v7x TCs stream W
_WEIGHT_BUFFERS = 3              # requested pipeline depth for the weight stream


@functools.lru_cache(maxsize=1)
def _vmem_params():
    """(per-weight-buffer byte budget, scoped-VMEM limit), generation-aware."""
    try:
        cap = int(pltpu.get_tpu_info().vmem_capacity_bytes)
    except Exception:
        cap = None
    if cap is not None and cap >= 96 * 1024 * 1024:
        # v5e / v6e: 128 MiB VMEM -> big full-K tiles + 3-deep weight pipeline.
        return 24 * 1024 * 1024, 88 * 1024 * 1024
    # v7x: 64 MiB per TensorCore (or unknown generation) -> stay conservative.
    return 10 * 1024 * 1024, 40 * 1024 * 1024


def _round_up(x, m):
    return ((x + m - 1) // m) * m


# ----------------------------- kernels --------------------------------------
# Path A: full contraction row resident (tk == K). No reduction axis, no scratch.

def _gemv_fullk_kernel(x_ref, w_ref, o_ref):
    acc = jax.lax.dot_general(
        x_ref[...], w_ref[...],
        dimension_numbers=(((1,), (0,)), ((), ())),
        preferred_element_type=jnp.float32,
    )
    o_ref[...] = acc.astype(o_ref.dtype)


def _gemv_fullk_bias_kernel(x_ref, w_ref, b_ref, o_ref):
    acc = jax.lax.dot_general(
        x_ref[...], w_ref[...],
        dimension_numbers=(((1,), (0,)), ((), ())),
        preferred_element_type=jnp.float32,
    )
    o_ref[...] = (acc + b_ref[...].astype(jnp.float32)).astype(o_ref.dtype)


# Path B (fallback for enormous K): K-tiled reduction with an f32 accumulator.
# x is fully resident as (nk, tk); the k-th chunk is a sublane-indexed row.

def _gemv_acc_kernel(x_ref, w_ref, o_ref, acc_ref):
    k = pl.program_id(1)

    @pl.when(k == 0)
    def _():
        acc_ref[...] = jnp.zeros_like(acc_ref)

    acc_ref[...] += jax.lax.dot_general(
        x_ref[pl.ds(k, 1), :], w_ref[...],
        dimension_numbers=(((1,), (0,)), ((), ())),
        preferred_element_type=jnp.float32,
    )

    @pl.when(k == pl.num_programs(1) - 1)
    def _():
        o_ref[...] = acc_ref[...].astype(o_ref.dtype)


def _gemv_acc_bias_kernel(x_ref, w_ref, b_ref, o_ref, acc_ref):
    k = pl.program_id(1)

    @pl.when(k == 0)
    def _():
        acc_ref[...] = jnp.zeros_like(acc_ref)

    acc_ref[...] += jax.lax.dot_general(
        x_ref[pl.ds(k, 1), :], w_ref[...],
        dimension_numbers=(((1,), (0,)), ((), ())),
        preferred_element_type=jnp.float32,
    )

    @pl.when(k == pl.num_programs(1) - 1)
    def _():
        o_ref[...] = (acc_ref[...] + b_ref[...].astype(jnp.float32)).astype(o_ref.dtype)


# ----------------------------- tiling ----------------------------------------

def _select_tiles(N, K, itemsize):
    """Pick (tn, tk). tk == K selects the no-reduction (full-row) path."""
    budget = _vmem_params()[0]
    k_bytes = K * itemsize
    w_bytes = N * k_bytes

    # tn alignment: 256 matches the v6e/v7x 2x256^2 MXU; fall back to the
    # 128-lane vreg width (also the v5e MXU tile) when N is too small.
    align = 256 if N >= 512 else 128

    if w_bytes <= budget:
        if w_bytes > _SPLIT_BYTES and N > align:
            # Split N into 2 blocks (ragged last block is fine, Pallas masks
            # the boundary) so both v7x TensorCores stream half of W.
            tn = _round_up(pl.cdiv(N, 2), align)
            if tn < N:
                return tn, K
        return N, K                               # single grid step

    rows = budget // k_bytes
    if rows >= 128:
        # Full-K rows, tiled over N only (1-D grid, no reduction axis).
        tn = (rows // align) * align
        if tn == 0:
            tn = (rows // 128) * 128
        # Prefer an even number of N blocks so the two v7x TCs balance.
        if pl.cdiv(N, tn) % 2 == 1 and tn > align:
            cand = tn - align
            while cand >= align:
                if pl.cdiv(N, cand) % 2 == 0:
                    tn = cand
                    break
                cand -= align
        return min(tn, N), K

    # K too large for full-row residency: 2-D grid + f32 accumulator.
    # Keep the lane (N) dim of the (tk, tn) weight tile wide (>= 512 where
    # possible) so each strided HBM row is >= 1 KiB contiguous.
    if N <= 128:
        tn = N
    else:
        tn = min(_round_up(min(N, 512), 128), N)
    tk = max(((budget // (tn * itemsize)) // align) * align, 128)
    return tn, min(tk, K)


def _weight_spec(block_shape, index_map, weight_steps):
    """Weight BlockSpec with a 3-deep pipeline when there is enough to stream."""
    if weight_steps >= _WEIGHT_BUFFERS:
        try:
            return pl.BlockSpec(block_shape, index_map,
                                pipeline_mode=pl.Buffered(_WEIGHT_BUFFERS))
        except (TypeError, AttributeError):
            pass  # older jax without pipeline_mode / Buffered
    return pl.BlockSpec(block_shape, index_map)


# ----------------------------- pallas wrapper --------------------------------

@functools.partial(jax.jit, static_argnames=("tn", "tk"))
def _gemv_pallas(x2d, w_kn, bias2d, *, tn, tk):
    K, N = w_kn.shape
    has_bias = bias2d is not None
    nj = pl.cdiv(N, tn)
    _, vmem_limit = _vmem_params()

    if tk == K:
        # Path A: full-K residency -> 1-D grid over N, no accumulator scratch.
        x_in = x2d
        grid = (nj,)
        in_specs = [
            pl.BlockSpec((1, K), lambda j: (0, 0)),           # x resident (one DMA)
            _weight_spec((K, tn), lambda j: (0, j), nj),      # streamed weight
        ]
        out_spec = pl.BlockSpec((1, tn), lambda j: (0, j))
        scratch = []
        if has_bias:
            in_specs.append(pl.BlockSpec((1, tn), lambda j: (0, j)))
            kernel = _gemv_fullk_bias_kernel
        else:
            kernel = _gemv_fullk_kernel
        dims = ("parallel",)
    else:
        # Path B: K-tiled reduction (only when K is too large for a full row).
        nk = pl.cdiv(K, tk)
        x_in = x2d.reshape(nk, tk)                            # row k == k-th chunk
        grid = (nj, nk)
        in_specs = [
            pl.BlockSpec((nk, tk), lambda j, k: (0, 0)),      # x resident (one DMA)
            _weight_spec((tk, tn), lambda j, k: (k, j), nj * nk),
        ]
        out_spec = pl.BlockSpec((1, tn), lambda j, k: (0, j))
        scratch = [pltpu.VMEM((1, tn), jnp.float32)]
        if has_bias:
            in_specs.append(pl.BlockSpec((1, tn), lambda j, k: (0, j)))
            kernel = _gemv_acc_bias_kernel
        else:
            kernel = _gemv_acc_kernel
        dims = ("parallel", "arbitrary")

    args = (x_in, w_kn) + ((bias2d,) if has_bias else ())
    return pl.pallas_call(
        kernel,
        out_shape=jax.ShapeDtypeStruct((1, N), x2d.dtype),
        grid_spec=pltpu.PrefetchScalarGridSpec(
            num_scalar_prefetch=0,
            grid=grid,
            in_specs=in_specs,
            out_specs=out_spec,
            scratch_shapes=scratch,
        ),
        compiler_params=pltpu.CompilerParams(
            dimension_semantics=dims,
            vmem_limit_bytes=vmem_limit,
        ),
    )(*args)


# ----------------------------- module ----------------------------------------

class ColumnParallelLinear:
    """JAX/Pallas port of the PyTorch ColumnParallelLinear (world_size=1)."""

    dtype = jnp.bfloat16  # stands in for torch.float16 (see TODO above)

    def __init__(self, in_features, out_features, bias=False, dtype=None, *, key):
        world_size = 1
        assert out_features % world_size == 0
        self.part_out_features = out_features // world_size
        self.in_features = in_features
        self.out_features = self.part_out_features
        wdtype = dtype or ColumnParallelLinear.dtype
        k_w, k_b = jax.random.split(key)
        # Deterministic synthetic parameters. Only the pre-transposed (K, N)
        # layout is kept on device (single HBM copy); the kernel consumes it
        # directly as the natural (1,K) x (K,N) MXU operand.
        w_out_in = (
            jax.random.normal(k_w, (self.out_features, in_features), jnp.float32)
            * (1.0 / math.sqrt(in_features))
        ).astype(wdtype)
        self.weight_kn = jnp.asarray(w_out_in.T)     # (K, N), the only copy kept
        if bias:
            # torch reference allocates bias in default (float32) dtype.
            self.bias = jax.random.normal(k_b, (self.out_features,), jnp.float32) * 0.1
        else:
            self.bias = None

    def __call__(self, x):
        # Mirror the reference `linear()`: all leading dims must multiply to 1.
        lead_shape = x.shape[:-1]
        K = x.shape[-1]
        assert x.size == K, "reference gemv path requires a single row vector"
        x2d = x.reshape(1, K)

        N = self.out_features
        bias2d = None if self.bias is None else self.bias.reshape(1, N)

        tn, tk = _select_tiles(N, K, jnp.dtype(self.weight_kn.dtype).itemsize)
        # TODO(synk): ragged K on the huge-K fallback path (K % tk != 0) is not
        # supported; unreachable for LLM shapes.
        assert tk == K or K % tk == 0

        y = _gemv_pallas(x2d, self.weight_kn, bias2d, tn=tn, tk=tk)
        return y.reshape(*lead_shape, N)


# ----------------------------- demo / check ----------------------------------

if __name__ == "__main__":
    key = jax.random.PRNGKey(0)
    k_x, k_p1, k_p2 = jax.random.split(key, 3)

    in_features = 256
    out_features = 384

    # Single-token input (batch=1, seq=1, hidden=256), as the gemv path requires.
    x = jax.random.normal(k_x, (1, 1, in_features), jnp.float32).astype(jnp.bfloat16)

    def reference(w_kn, bias, xv):
        y = xv.reshape(1, in_features).astype(jnp.float32) @ w_kn.astype(jnp.float32)
        if bias is not None:
            y = y + bias
        return y

    # Main module path (single-tile Path A), with and without bias.
    for use_bias in (True, False):
        layer = ColumnParallelLinear(in_features, out_features, bias=use_bias,
                                     key=(k_p1 if use_bias else k_p2))
        y = jax.block_until_ready(layer(x))
        assert y.shape == (1, 1, out_features)
        assert y.dtype == x.dtype
        y_ref = reference(layer.weight_kn, layer.bias, x)
        err = float(jnp.max(jnp.abs(
            y.reshape(1, -1).astype(jnp.float32) - y_ref)))
        assert err < 5e-2, f"max abs err {err} (bias={use_bias})"

    # Extra coverage at small shapes: (a) N-tiled Path A (3 weight tiles ->
    # exercises the buffered weight pipeline and the parallel N axis), and
    # (b) Path B with a K-tiled f32 accumulator (pl.when init/finalize).
    layer = ColumnParallelLinear(in_features, out_features, bias=False, key=k_p2)
    x2d = x.reshape(1, in_features)
    y_ref = reference(layer.weight_kn, None, x)
    for tn, tk in ((128, in_features), (out_features, 128)):
        y = jax.block_until_ready(
            _gemv_pallas(x2d, layer.weight_kn, None, tn=tn, tk=tk))
        err = float(jnp.max(jnp.abs(y.astype(jnp.float32) - y_ref)))
        assert err < 5e-2, f"max abs err {err} (tn={tn}, tk={tk})"

    print("KERNEL_OK")
</pallas_src>

<mosaic_0001>
module attributes {stable_mosaic.version = 11 : i64} {
  func.func @_gemv_fullk_bias_kernel(%arg0: i32, %arg1: memref<1x256xbf16, #tpu.memory_space<vmem>>, %arg2: memref<256x384xbf16, #tpu.memory_space<vmem>>, %arg3: memref<1x384xf32, #tpu.memory_space<vmem>>, %arg4: memref<1x384xbf16, #tpu.memory_space<vmem>>) attributes {dimension_semantics = [#tpu.dimension_semantics<parallel>], iteration_bounds = array<i64: 1>, scalar_prefetch = 0 : i64, scratch_operands = 0 : i64, tpu.core_type = #tpu.core_type<tc>, window_params = [{pipeline_mode = #tpu.pipeline_mode<synchronous>, transform_indices = @transform_0, window_bounds = array<i64: 1, 256>}, {transform_indices = @transform_1, window_bounds = array<i64: 256, 384>}, {transform_indices = @transform_2, window_bounds = array<i64: 1, 384>}, {transform_indices = @transform_3, window_bounds = array<i64: 1, 384>}]} {
    %c0 = arith.constant 0 : index
    %c0_0 = arith.constant 0 : index
    %0 = vector.load %arg1[%c0, %c0_0] : memref<1x256xbf16, #tpu.memory_space<vmem>>, vector<1x256xbf16>
    %c0_1 = arith.constant 0 : index
    %c0_2 = arith.constant 0 : index
    %1 = vector.load %arg2[%c0_1, %c0_2] : memref<256x384xbf16, #tpu.memory_space<vmem>>, vector<256x384xbf16>
    %cst = arith.constant dense<0.000000e+00> : vector<1x384xf32>
    %2 = tpu.matmul %0, %1, %cst {dimension_numbers = #tpu.dot_dimension_numbers<[1], [0], [0], [1], [0, 0, 1, 1], [], []>} : vector<1x256xbf16>, vector<256x384xbf16>, vector<1x384xf32> -> vector<1x384xf32>
    %c0_3 = arith.constant 0 : index
    %c0_4 = arith.constant 0 : index
    %3 = vector.load %arg3[%c0_3, %c0_4] : memref<1x384xf32, #tpu.memory_space<vmem>>, vector<1x384xf32>
    %4 = arith.addf %2, %3 : vector<1x384xf32>
    %5 = arith.truncf %4 : vector<1x384xf32> to vector<1x384xbf16>
    %c0_5 = arith.constant 0 : index
    %c0_6 = arith.constant 0 : index
    %6 = vector.load %arg4[%c0_5, %c0_6] : memref<1x384xbf16, #tpu.memory_space<vmem>>, vector<1x384xbf16>
    tpu.vector_store %arg4[%c0_5, %c0_6], %5 {strides = array<i32>} : memref<1x384xbf16, #tpu.memory_space<vmem>>, vector<1x384xbf16>,
    return
  }
  func.func @transform_0(%arg0: i32) -> (i32, i32) {
    %c0_i32 = arith.constant 0 : i32
    %c0_i32_0 = arith.constant 0 : i32
    %c0_i32_1 = arith.constant 0 : i32
    return %c0_i32, %c0_i32_0 : i32, i32
  }
  func.func @transform_1(%arg0: i32) -> (i32, i32) {
    %c0_i32 = arith.constant 0 : i32
    %c0_i32_0 = arith.constant 0 : i32
    return %c0_i32, %arg0 : i32, i32
  }
  func.func @transform_2(%arg0: i32) -> (i32, i32) {
    %c0_i32 = arith.constant 0 : i32
    %c0_i32_0 = arith.constant 0 : i32
    return %c0_i32, %arg0 : i32, i32
  }
  func.func @transform_3(%arg0: i32) -> (i32, i32) {
    %c0_i32 = arith.constant 0 : i32
    %c0_i32_0 = arith.constant 0 : i32
    return %c0_i32, %arg0 : i32, i32
  }
}

</mosaic_0001>

<bundles_post_ra>
// kernel: _gemv_pallas.1
= control target key start
LH: loop header
LB: loop body
LE: loop exit
PB: predicated region body
PF: predicated region fallthrough
CT: control target
= control target key end

     0   :  { %8 = vsyncpa [#allocation3], 0  ;;  %s811_s0 = inlined_call_operand.hbm [shape: bf16[1,256], index: 0, kind: input, shape index: {}]   ;;  %s812_s1 = inlined_call_operand.hbm [shape: bf16[256,384], index: 1, kind: input, shape index: {}]   ;;  %s813_s2 = inlined_call_operand.vmem [shape: f32[1,384], index: 2, kind: input, shape index: {}]   ;;  %s814_s3 = inlined_call_operand.hbm [shape: bf16[1,384], index: 3, kind: output, shape index: {}]  }
   0x1   :  { %9 = vsyncpa [#allocation6], 0 }
   0x2   :  { %10 = vsyncpa [#allocation4], 0  ;;  %s754_s12 = smov [#allocation2]   ;;  %s755_s14 = smov [#allocation5]  }
   0x3   :  { %s17_s13 = sshll.u32 %s754_s12, 4  ;;  %s26_s15 = sshll.u32 %s755_s14, 4  ;;  %s18_s13 = int_to_ptr.vmem [resolvable:$true] %s17_s13  ;;  %s27_s15 = int_to_ptr.vmem [resolvable:$true] %s26_s15 }
   0x4   :  { %s696_s16 = scalar_lea.vmem %s18_s13, 32  ;;  %p701_p1 = scmp.lt.s32.totalorder %s18_s13, %s18_s13 }
   0x5   :  { %p697_p0 = scmp.ne.s32.totalorder %s18_s13, %s696_s16  ;;  %p702_p2 = scmp.lt.s32.totalorder %s696_s16, %s696_s16 }
   0x7   :  { %p703_p3 = por %p702_p2, %p701_p1 }
   0x9   :  { %p704_p4 = pnand %p703_p3, %p697_p0 }
   0xb   :  { %707 = shalt.err (!%p704_p4)
}
   0xc   :  { %20 = dma.hbm_to_vmem [thread:$0]  %s811_s0, 32, %s18_s13, [#allocation3]  }
   0xd   :  { %s716_s19 = scalar_lea.vmem %s27_s15, 6144  ;;  %p721_p6 = scmp.lt.s32.totalorder %s27_s15, %s27_s15 }
   0xe   :  { %p717_p5 = scmp.ne.s32.totalorder %s27_s15, %s716_s19  ;;  %p722_p7 = scmp.lt.s32.totalorder %s716_s19, %s716_s19 }
  0x10   :  { %p723_p8 = por %p722_p7, %p721_p6 }
  0x12   :  { %p724_p9 = pnand %p723_p8, %p717_p5 }
  0x14   :  { %727 = shalt.err (!%p724_p9)
}
  0x15   :  { %s756_s20 = smov 192   ;;  %s757_s21 = smov 12  }
  0x16   :  { %32 = dma.hbm_to_vmem [thread:$0]  %s812_s1, 6144, %s27_s15, [#allocation6], %s756_s20, %s756_s20, %s757_s21  }
  0x17   :  { %748 = dma.done.wait [#allocation3], 32  }
  0x18   :  { %749 = vsyncadd [#allocation3], 4294967264 }
  0x19   :  { %750 = dma.done.wait [#allocation6], 6144  }
  0x1a   :  { %751 = vsyncadd [#allocation6], 4294961152  ;;  %v624_v0 = vld [vmem:[#allocation5 + $0xac] ss:$12 sps:$4 sm:$0xff]   ;;  %v626_v1 = vld [vmem:[#allocation5 + $0xa8] ss:$12 sps:$4 sm:$0xff]   ;;  %v120_v24 = vlaneseq }
  0x1b   :  { %405 = vmatprep.subr.bf16.mxu0 %v624_v0  ;;  %v627_v2 = vld [vmem:[#allocation5 + $0x94] ss:$12 sps:$4 sm:$0xff]   ;;  %v629_v3 = vld [vmem:[#allocation5 + $0x90] ss:$12 sps:$4 sm:$0xff]   ;;  %v632_v5 = vld [vmem:[#allocation5 + $0x78] ss:$12 sps:$4 sm:$0xff]  }
  0x1c   :  { %406 = vmatpush1.bf16.msra.mxu0 %v626_v1  ;;  %v630_v4 = vld [vmem:[#allocation5 + $0x7c] ss:$12 sps:$4 sm:$0xff]   ;;  %v633_v6 = vld [vmem:[#allocation5 + $0x64] ss:$12 sps:$4 sm:$0xff]   ;;  %v635_v8 = vld [vmem:[#allocation5 + $0x60] ss:$12 sps:$4 sm:$0xff]  }
  0x1d   :  { %407 = vmatprep.subr.bf16.mxu0 %v627_v2  ;;  %v644_v7 = vld [vmem:[#allocation5 + $0x170] ss:$12 sps:$4 sm:$0xff]   ;;  %v636_v10 = vld [vmem:[#allocation5 + $0x4c] ss:$12 sps:$4 sm:$0xff]   ;;  %v638_v13 = vld [vmem:[#allocation5 + $0x48] ss:$12 sps:$4 sm:$0xff]  }
  0x1e   :  { %596 = vmatprep.subr.bf16.mxu1 %v644_v7  ;;  %v646_v9 = vld [vmem:[#allocation5 + $0xb0] ss:$12 sps:$4 sm:$0xff]   ;;  %v649_v11 = vld [vmem:[#allocation5 + $0x158] ss:$12 sps:$4 sm:$0xff]   ;;  %v639_v14 = vld [vmem:[#allocation5 + $0x34] ss:$12 sps:$4 sm:$0xff]  }
  0x1f   :  { %597 = vmatpush3.bf16.msra.mxu1 %v646_v9  ;;  %v651_v12 = vld [vmem:[#allocation5 + $0x98] ss:$12 sps:$4 sm:$0xff]   ;;  %v654_v15 = vld [vmem:[#allocation5 + $0x140] ss:$12 sps:$4 sm:$0xff]   ;;  %v641_v17 = vld [vmem:[#allocation5 + $0x30] ss:$12 sps:$4 sm:$0xff]  }
  0x20   :  { %408 = vmatpush1.bf16.msra.mxu0 %v629_v3  ;;  %598 = vmatprep.subr.bf16.mxu1 %v649_v11  ;;  %v656_v16 = vld [vmem:[#allocation5 + $0x80] ss:$12 sps:$4 sm:$0xff]   ;;  %v659_v18 = vld [vmem:[#allocation5 + $0x128] ss:$12 sps:$4 sm:$0xff]   ;;  %v645_v21 = vld [vmem:[#allocation5 + $0x18] ss:$12 sps:$4 sm:$0xff]  }
  0x21   :  { %409 = vmatprep.subr.bf16.mxu0 %v630_v4  ;;  %v642_v19 = vld [vmem:[#allocation5 + $0x1c] ss:$12 sps:$4 sm:$0xff]   ;;  %v647_v23 = vld [vmem:[#allocation5 + $0x4] ss:$12 sps:$4 sm:$0xff]   ;;  %v758_v27 = vmov 1966171168  }
  0x22   :  { %v661_v20 = vld [vmem:[#allocation5 + $0x68] ss:$12 sps:$4 sm:$0xff]   ;;  %v664_v22 = vld [vmem:[#allocation5 + $0x110] ss:$12 sps:$4 sm:$0xff]   ;;  %v669_v26 = vld [vmem:[#allocation5 + $0xf8] ss:$12 sps:$4 sm:$0xff]   ;;  %v118_v28 = vunpack.c.l.s4 %v758_v27 }
  0x23   :  { %599 = vmatpush3.bf16.msra.mxu1 %v651_v12  ;;  %v666_v25 = vld [vmem:[#allocation5 + $0x50] ss:$12 sps:$4 sm:$0xff]   ;;  %v650_v29 = vld [vmem:[#allocation5] ss:$12 sps:$4 sm:$0xff]   ;;  %v786_v31 = vshrl.u32 %v120_v24, 7  ;;  %vm516_vm0 = vcmask 1040384  }
  0x24   :  { %410 = vmatpush1.bf16.msra.mxu0 %v632_v5  ;;  %600 = vmatprep.subr.bf16.mxu1 %v654_v15  ;;  %v652_v30 = vld [vmem:[#allocation5 + $0x16c] ss:$12 sps:$4 sm:$0xff]   ;;  %v119_v34 = vunpack.c.0.s8 %v118_v28  ;;  %v655_v35 = vld [vmem:[#allocation5 + $0x168] ss:$12 sps:$4 sm:$0xff]   ;;  %v660_v37 = vld [vmem:[#allocation5 + $0x150] ss:$12 sps:$4 sm:$0xff]  }
  0x25   :  { %411 = vmatprep.subr.bf16.mxu0 %v633_v6  ;;  %v671_v32 = vld [vmem:[#allocation5 + $0x38] ss:$12 sps:$4 sm:$0xff]   ;;  %v674_v33 = vld [vmem:[#allocation5 + $0xe0] ss:$12 sps:$4 sm:$0xff]   ;;  %v679_v39 = vld [vmem:[#allocation5 + $0xc8] ss:$12 sps:$4 sm:$0xff]  }
  0x26   :  { %v657_v36 = vld [vmem:[#allocation5 + $0x154] ss:$12 sps:$4 sm:$0xff]   ;;  %v789_v40 = vsub.s32 %v119_v34, %v786_v31  ;;  %v546_v41 = vld.sshfl [vmem:[#allocation2] sm:$0x11 pattern:$0x75316420] }
  0x27   :  { %601 = vmatpush3.bf16.msra.mxu1 %v656_v16  ;;  %v676_v38 = vld [vmem:[#allocation5 + $0x20] ss:$12 sps:$4 sm:$0xff]   ;;  %v662_v42 = vld [vmem:[#allocation5 + $0x13c] ss:$12 sps:$4 sm:$0xff]   ;;  %v116_v43 = vcombine.high %v546_v41, %v546_v41  ;;  %v665_v46 = vld [vmem:[#allocation5 + $0x138] ss:$12 sps:$4 sm:$0xff]  }
  0x28   :  { %412 = vmatpush1.bf16.msra.mxu0 %v635_v8  ;;  %602 = vmatprep.subr.bf16.mxu1 %v659_v18  ;;  %v681_v44 = vld [vmem:[#allocation5 + $0x8] ss:$12 sps:$4 sm:$0xff]   ;;  %v667_v47 = vld [vmem:[#allocation5 + $0x124] ss:$12 sps:$4 sm:$0xff]   ;;  %v123_v48 = vrot.slane %v546_v41, %v789_v40  ;;  %v670_v49 = vld [vmem:[#allocation5 + $0x120] ss:$12 sps:$4 sm:$0xff]  }
  0x29   :  { %413 = vmatprep.subr.bf16.mxu0 %v636_v10  ;;  %v130_v45 = vrot.slane %v116_v43, %v789_v40  ;;  %v672_v50 = vld [vmem:[#allocation5 + $0x10c] ss:$12 sps:$4 sm:$0xff]   ;;  %v675_v51 = vld [vmem:[#allocation5 + $0x108] ss:$12 sps:$4 sm:$0xff]   ;;  %v680_v53 = vld [vmem:[#allocation5 + $0xf0] ss:$12 sps:$4 sm:$0xff]  }
  0x2a   :  { %v677_v52 = vld [vmem:[#allocation5 + $0xf4] ss:$12 sps:$4 sm:$0xff]   ;;  %v682_v54 = vld [vmem:[#allocation5 + $0xdc] ss:$12 sps:$4 sm:$0xff]   ;;  %v684_v55 = vld [vmem:[#allocation5 + $0xd8] ss:$12 sps:$4 sm:$0xff]  }
  0x2b   :  { %603 = vmatpush3.bf16.msra.mxu1 %v661_v20  ;;  %478 = vmatprep.mubr.bf16.mxu1 %v130_v45  ;;  %v685_v56 = vld [vmem:[#allocation5 + $0xc4] ss:$12 sps:$4 sm:$0xff]   ;;  %v687_v57 = vld [vmem:[#allocation5 + $0xc0] ss:$12 sps:$4 sm:$0xff]   ;;  %v400_v62 = vsub.s32 2, %v786_v31  ;;  %v392_v0 = vsub.s32 0, %v786_v31 }
  0x2c   :  { %414 = vmatpush1.bf16.msra.mxu0 %v638_v13  ;;  %604 = vmatprep.subr.bf16.mxu1 %v664_v22  ;;  %v107_v63 = vld [vmem:[%s813_s2] sm:$0x7]  ;;  %v396_v3 = vsub.s32 1, %v786_v31  ;;  %vm517_vm1 = vsmask.f32 256  ;;  %vm519_vm2 = vcmask 1041409  }
  0x2d   :  { %415 = vmatprep.subr.bf16.mxu0 %v639_v14  ;;  %437 = vmatprep.mubr.bf16.mxu0 %v130_v45  ;;  %v401_v1 = vrot.slane %v107_v63, %v400_v62  ;;  %v393_v4 = vrot.slane %v107_v63, %v392_v0  ;;  %vm520_vm3 = vsmask.f32 1280  ;;  %vm799_vm4 = vmand %vm516_vm0, %vm517_vm1  ;;  %vm523_vm6 = vcmask 1042434   ;;  %s759_s2 = smov [#allocation7]  }
  0x2e   :  { %v397_v6 = vrot.slane %v107_v63, %v396_v3  ;;  %vm521_vm5 = vmand %vm519_vm2, %vm520_vm3  ;;  %vm524_vm7 = vsmask.f32 2304  ;;  %s536_s24 = sshll.u32 %s759_s2, 4  ;;  %s537_s24 = int_to_ptr.vmem [resolvable:$true] %s536_s24 }
  0x2f   :  { %605 = vmatpush3.bf16.msra.mxu1 %v666_v25  ;;  %vm522_vm8 = vmor %vm521_vm5, %vm799_vm4  ;;  %s728_s25 = scalar_lea.vmem %s537_s24, 48  ;;  %s732_s26 = scalar_lea.vmem %s537_s24, 64 }
  0x30   :  { %416 = vmatpush1.bf16.msra.mxu0 %v641_v17  ;;  %606 = vmatprep.subr.bf16.mxu1 %v669_v26  ;;  %vm525_vm9 = vmand %vm523_vm6, %vm524_vm7  ;;  %p729_p10 = scmp.ne.s32.totalorder %s537_s24, %s728_s25  ;;  %p733_p11 = scmp.lt.s32.totalorder %s537_s24, %s537_s24 }
  0x31   :  { %417 = vmatprep.subr.bf16.mxu0 %v642_v19  ;;  %vm526_vm10 = vmor %vm525_vm9, %vm522_vm8  ;;  %v527_v19 = vld [vmem:[#allocation7] sm:$0x7]  ;;  %p734_p12 = scmp.lt.s32.totalorder %s732_s26, %s728_s25 }
  0x33   :  { %607 = vmatpush3.bf16.msra.mxu1 %v671_v32  ;;  %p735_p13 = por %p734_p12, %p733_p11 }
  0x34   :  { %418 = vmatpush1.bf16.msra.mxu0 %v645_v21  ;;  %608 = vmatprep.subr.bf16.mxu1 %v674_v33 }
  0x35   :  { %419 = vmatprep.subr.bf16.mxu0 %v647_v23  ;;  %p736_p0 = pnand %p735_p13, %p729_p10 }
  0x37   :  { %609 = vmatpush3.bf16.msra.mxu1 %v676_v38 }
  0x38   :  { %420 = vmatpush1.bf16.msra.mxu0 %v650_v29  ;;  %610 = vmatprep.subr.bf16.mxu1 %v679_v39 }
  0x39   :  { %421 = vmatprep.subr.bf16.mxu0 %v652_v30 }
  0x3b   :  { %611 = vmatpush3.bf16.msra.mxu1 %v681_v44 }
  0x3c   :  { %422 = vmatpush2.bf16.msra.mxu0 %v655_v35 }
  0x3d   :  { %423 = vmatprep.subr.bf16.mxu0 %v657_v36 }
  0x3e   :  { %479 = vmatmul.mubr.bf16.vlgmr.msra.gmra.mxu1 %v123_v48 }
  0x40   :  { %424 = vmatpush2.bf16.msra.mxu0 %v660_v37 }
  0x41   :  { %425 = vmatprep.subr.bf16.mxu0 %v662_v42 }
  0x44   :  { %426 = vmatpush2.bf16.msra.mxu0 %v665_v46 }
  0x45   :  { %427 = vmatprep.subr.bf16.mxu0 %v667_v47 }
  0x48   :  { %428 = vmatpush2.bf16.msra.mxu0 %v670_v49 }
  0x49   :  { %429 = vmatprep.subr.bf16.mxu0 %v672_v50 }
  0x4c   :  { %430 = vmatpush2.bf16.msra.mxu0 %v675_v51 }
  0x4d   :  { %431 = vmatprep.subr.bf16.mxu0 %v677_v52 }
  0x50   :  { %432 = vmatpush2.bf16.msra.mxu0 %v680_v53 }
  0x51   :  { %433 = vmatprep.subr.bf16.mxu0 %v682_v54 }
  0x54   :  { %434 = vmatpush2.bf16.msra.mxu0 %v684_v55 }
  0x55   :  { %435 = vmatprep.subr.bf16.mxu0 %v685_v56 }
  0x58   :  { %436 = vmatpush2.bf16.msra.mxu0 %v687_v57 }
  0x5b   :  { %438 = vmatmul.mubr.bf16.vlgmr.msra.gmra.mxu0 %v123_v48 }
  0xfe   :  { %v612_v58 = vpop.f32.mrf.mxu1 }
 0x100   :  { %v613_v59 = vpop.f32.mrf.mxu1 }
 0x101   :  { %v614_v2 = vadd.f32 %v613_v59, %v612_v58 }
 0x102   :  { %v615_v60 = vpop.f32.mrf.mxu1 }
 0x103   :  { %v481_v5 = vadd.f32 %v614_v2, %v401_v1 }
 0x104   :  { %v616_v61 = vpop.f32.mrf.mxu1 }
 0x105   :  { %v488_v10 = vpack.c.bf16 %v481_v5, %v481_v5 }
 0x107   :  { %v506_v16 = vrot.slane %v488_v10, %v789_v40 }
 0x11b   :  { %v439_v7 = vpop.f32.mrf.mxu0 }
 0x11c   :  { %v440_v11 = vadd.f32 %v439_v7, %v393_v4 }
 0x11d   :  { %v441_v8 = vpop.f32.mrf.mxu0 }
 0x11e   :  { %v442_v12 = vadd.f32 %v441_v8, %v397_v6 }
 0x11f   :  { %v443_v13 = vpop.f32.mrf.mxu0 }
 0x120   :  { %v595_v14 = vpack.c.bf16 %v442_v12, %v440_v11 }
 0x121   :  { %v444_v15 = vpop.f32.mrf.mxu0 }
 0x122   :  { %v499_v17 = vrot.slane %v595_v14, %v789_v40 }
 0x124   :  { %v507_v18 = vcombine.low %v499_v17, %v506_v16 }
 0x126   :  { %v514_v20 = vrot.slane %v507_v18, %v789_v40 }
 0x128   :  { %v528_v21 = vsel %vm526_vm10, %v514_v20, %v527_v19 }
 0x129   :  { %529 = vst [vmem:[#allocation7] sm:$0x7] %v528_v21 }
 0x12a   :  { %739 = shalt.err (!%p736_p0)
}
 0x12b   :  { %539 = dma.vmem_to_hbm [thread:$0]  %s537_s24, 48, %s814_s3, [#allocation4]  }
 0x12c   :  { %752 = dma.done.wait [#allocation4], 48  }
 0x12d   :  { %753 = vsyncadd [#allocation4], 4294967248 }
 0x12e   :  { %543 = vsyncpa [#allocation3], 1 }
 0x12f   :  { %544 = vsyncpa [#allocation6], 1 }
 0x130   :  { %545 = vsyncpa [#allocation4], 1 }

</bundles_post_ra>
